<compile_context>
chip_gen: v7x
topology: tpu7x:2x2x1
jax: 0.10.0
libtpu: 0.0.40
codegen_flags: <defaults>
</compile_context>

<pallas_src>
import math

import jax
import jax.numpy as jnp
from jax.experimental import pallas as pl
from jax.experimental.pallas import tpu as pltpu

_LANE = 128


def _round_up(n, m):
    return -(-n // m) * m


def _device_params():
    """(target_block_bytes, tensorcores_per_chip) per TPU generation."""
    try:
        kind = jax.devices()[0].device_kind.lower()
    except Exception:
        kind = ""
    if "v5" in kind:                       # v5e: 16 MiB scoped-VMEM default
        return 3 * 1024 * 1024, 1
    if "v6" in kind:                       # v6e: 32 MiB scoped default
        return 4 * 1024 * 1024, 1
    if "v7" in kind:                       # v7x: 2 TCs, 64 MiB physical VMEM
        return 6 * 1024 * 1024, 2
    return 4 * 1024 * 1024, 1              # conservative default


def _normalize_kernel(x_ref, o_ref):
    # (x - 0.5) / 0.5  ==  (x - 0.5) * 2.0   (division by 0.5 is exact)
    x = x_ref[...]
    half = jnp.asarray(0.5, x.dtype)
    two = jnp.asarray(2.0, x.dtype)
    o_ref[...] = ((x - half) * two).astype(o_ref.dtype)


def normalize_layer(x):
    """Forward pass of NormalizeLayer: (x - 0.5) / 0.5."""
    orig_shape = x.shape

    # PyTorch promotes int - 0.5 to float; mirror that by upcasting here.
    if not jnp.issubdtype(x.dtype, jnp.floating):
        x = x.astype(jnp.float32)
    dtype = x.dtype

    total = math.prod(orig_shape) if orig_shape else 1
    if total == 0:
        return jnp.zeros(orig_shape, dtype)

    itemsize = jnp.dtype(dtype).itemsize
    packing = 32 // itemsize               # sublane packing: 8 f32, 16 bf16, 32 int8/fp8

    rows = pl.cdiv(total, _LANE)
    pad = rows * _LANE - total

    target_bytes, n_tc = _device_params()

    # Byte-budgeted block rows, rounded to the dtype's sublane packing.
    block_rows = max(packing, (target_bytes // (_LANE * itemsize)) // packing * packing)
    # Never larger than the (packing-rounded) whole array.
    block_rows = min(block_rows, _round_up(rows, packing))
    # On 2-TC chips ensure >= 2 blocks so the "parallel" axis shards across both cores.
    if n_tc >= 2 and rows > packing:
        block_rows = min(block_rows, _round_up(pl.cdiv(rows, 2), packing))

    n_blocks = pl.cdiv(rows, block_rows)

    x_flat = jnp.ravel(x)
    if pad:
        # Minimal pad only in the (uncommon) total % 128 != 0 case.
        x_flat = jnp.pad(x_flat, (0, pad))
    x2d = x_flat.reshape(rows, _LANE)

    out2d = pl.pallas_call(
        _normalize_kernel,
        out_shape=jax.ShapeDtypeStruct((rows, _LANE), dtype),
        grid=(n_blocks,),
        in_specs=[pl.BlockSpec((block_rows, _LANE), lambda i: (i, 0))],
        out_specs=pl.BlockSpec((block_rows, _LANE), lambda i: (i, 0)),
        compiler_params=pltpu.CompilerParams(
            dimension_semantics=("parallel",)),
    )(x2d)

    if pad:
        return out2d.reshape(-1)[:total].reshape(orig_shape)
    return out2d.reshape(orig_shape)


if __name__ == "__main__":
    key = jax.random.PRNGKey(0)

    # Image-like input, matching the classifier's NCHW usage.
    N, C, H, W = 2, 4, 16, 16
    x = jax.random.uniform(key, (N, C, H, W), dtype=jnp.float32)

    out = jax.block_until_ready(normalize_layer(x))
    ref = (x - 0.5) / 0.5
    assert out.shape == x.shape and out.dtype == x.dtype
    assert jnp.allclose(out, ref, atol=1e-6, rtol=1e-6), (
        float(jnp.max(jnp.abs(out - ref))))

    # Shape whose element count is not a multiple of 128 (pad/slice path).
    x2 = jax.random.uniform(jax.random.PRNGKey(1), (3, 3, 28, 28),
                            dtype=jnp.float32)
    out2 = jax.block_until_ready(normalize_layer(x2))
    assert jnp.allclose(out2, (x2 - 0.5) / 0.5, atol=1e-6, rtol=1e-6)

    # bf16 path (exercises the 16-row sublane packing).
    x3 = jax.random.uniform(jax.random.PRNGKey(2), (2, 4, 16, 16),
                            dtype=jnp.bfloat16)
    out3 = jax.block_until_ready(normalize_layer(x3))
    assert out3.dtype == jnp.bfloat16
    assert jnp.allclose(out3.astype(jnp.float32),
                        (x3.astype(jnp.float32) - 0.5) / 0.5,
                        atol=1e-2, rtol=1e-2)

    # Integer input upcasts to float32 (PyTorch promotion semantics).
    x4 = jax.random.randint(jax.random.PRNGKey(3), (2, 4, 16, 16), 0, 2,
                            dtype=jnp.int32)
    out4 = jax.block_until_ready(normalize_layer(x4))
    assert out4.dtype == jnp.float32
    assert jnp.allclose(out4, (x4.astype(jnp.float32) - 0.5) / 0.5,
                        atol=1e-6, rtol=1e-6)

    print("KERNEL_OK")
</pallas_src>

<mosaic_0001>
module attributes {stable_mosaic.version = 11 : i64} {
  func.func @_normalize_kernel(%arg0: i32, %arg1: memref<16x128xf32, #tpu.memory_space<vmem>>, %arg2: memref<16x128xf32, #tpu.memory_space<vmem>>) attributes {dimension_semantics = [#tpu.dimension_semantics<parallel>], iteration_bounds = array<i64: 1>, scalar_prefetch = 0 : i64, scratch_operands = 0 : i64, tpu.core_type = #tpu.core_type<tc>, window_params = [{transform_indices = @transform_0, window_bounds = array<i64: 16, 128>}, {transform_indices = @transform_1, window_bounds = array<i64: 16, 128>}]} {
    %c0 = arith.constant 0 : index
    %c0_0 = arith.constant 0 : index
    %0 = vector.load %arg1[%c0, %c0_0] : memref<16x128xf32, #tpu.memory_space<vmem>>, vector<16x128xf32>
    %cst = arith.constant 5.000000e-01 : f32
    %1 = vector.broadcast %cst : f32 to vector<16x128xf32>
    %2 = arith.subf %0, %1 : vector<16x128xf32>
    %cst_1 = arith.constant 2.000000e+00 : f32
    %3 = vector.broadcast %cst_1 : f32 to vector<16x128xf32>
    %4 = arith.mulf %2, %3 : vector<16x128xf32>
    %c0_2 = arith.constant 0 : index
    %c0_3 = arith.constant 0 : index
    %5 = vector.load %arg2[%c0_2, %c0_3] : memref<16x128xf32, #tpu.memory_space<vmem>>, vector<16x128xf32>
    tpu.vector_store %arg2[%c0_2, %c0_3], %4 {strides = array<i32>} : memref<16x128xf32, #tpu.memory_space<vmem>>, vector<16x128xf32>,
    return
  }
  func.func @transform_0(%arg0: i32) -> (i32, i32) {
    %c0_i32 = arith.constant 0 : i32
    %c0_i32_0 = arith.constant 0 : i32
    return %arg0, %c0_i32 : i32, i32
  }
  func.func @transform_1(%arg0: i32) -> (i32, i32) {
    %c0_i32 = arith.constant 0 : i32
    %c0_i32_0 = arith.constant 0 : i32
    return %arg0, %c0_i32 : i32, i32
  }
}

</mosaic_0001>

<bundles_post_ra>
// kernel: tpu_custom_call.1
= control target key start
LH: loop header
LB: loop body
LE: loop exit
PB: predicated region body
PF: predicated region fallthrough
CT: control target
= control target key end

     0   :  { %6 = vsyncpa [#allocation3], 0  ;;  %s146_s0 = inlined_call_operand.hbm [shape: f32[16,128], index: 0, kind: input, shape index: {}]   ;;  %s147_s1 = inlined_call_operand.hbm [shape: f32[16,128], index: 1, kind: output, shape index: {}]  }
   0x1   :  { %7 = vsyncpa [#allocation4], 0  ;;  %s102_s6 = smov [#allocation2]   ;;  %s54_s10 = scalar_lea.hbm %s146_s0, 256 }
   0x2   :  { %s13_s7 = sshll.u32 %s102_s6, 4  ;;  %p55_p0 = scmp.ne.s32.totalorder %s146_s0, %s54_s10  ;;  %s14_s7 = int_to_ptr.vmem [resolvable:$true] %s13_s7 }
   0x3   :  { %p58_p1 = scmp.lt.u32.totalorder %s54_s10, %s146_s0 }
   0x5   :  { %p60_p2 = pnand %p58_p1, %p55_p0 }
   0x7   :  { %63 = shalt.err (!%p60_p2)
}
   0x8   :  { %s64_s15 = scalar_lea.vmem %s14_s7, 256  ;;  %p69_p4 = scmp.lt.s32.totalorder %s14_s7, %s14_s7 }
   0x9   :  { %p65_p3 = scmp.ne.s32.totalorder %s14_s7, %s64_s15  ;;  %p70_p5 = scmp.lt.s32.totalorder %s64_s15, %s64_s15 }
   0xb   :  { %p71_p6 = por %p70_p5, %p69_p4 }
   0xd   :  { %p72_p7 = pnand %p71_p6, %p65_p3 }
   0xf   :  { %75 = shalt.err (!%p72_p7)
}
  0x10   :  { %s103_s16 = smov 128   ;;  %s104_s17 = smov 8  }
  0x11   :  { %19 = dma.hbm_to_vmem [thread:$0]  %s146_s0, 256, %s14_s7, [#allocation3], %s103_s16, %s103_s16, %s104_s17  }
  0x12   :  { %98 = dma.done.wait [#allocation3], 256  }
  0x13   :  { %99 = vsyncadd [#allocation3], 4294967040  ;;  %v23_v0 = vld [vmem:[#allocation2] sm:$0xff]  ;;  %v24_v1 = vld [vmem:[#allocation2 + $0x8] sm:$0xff]  ;;  %s105_s20 = smov [#allocation5]  }
  0x14   :  { %s36_s21 = sshll.u32 %s105_s20, 4  ;;  %v48_v2 = vadd.f32 -0.5, %v23_v0  ;;  %v49_v3 = vadd.f32 -0.5, %v24_v1  ;;  %s37_s21 = int_to_ptr.vmem [resolvable:$true] %s36_s21 }
  0x15   :  { %s76_s22 = scalar_lea.vmem %s37_s21, 256  ;;  %p81_p9 = scmp.lt.s32.totalorder %s37_s21, %s37_s21 }
  0x16   :  { %v27_v4 = vmul.f32 2.0, %v48_v2  ;;  %v28_v5 = vmul.f32 2.0, %v49_v3  ;;  %p77_p8 = scmp.ne.s32.totalorder %s37_s21, %s76_s22  ;;  %p82_p10 = scmp.lt.s32.totalorder %s76_s22, %s76_s22 }
  0x18   :  { %29 = vst [vmem:[#allocation5] sm:$0xff] %v27_v4  ;;  %30 = vst [vmem:[#allocation5 + $0x8] sm:$0xff] %v28_v5  ;;  %p83_p11 = por %p82_p10, %p81_p9 }
  0x1a   :  { %p84_p12 = pnand %p83_p11, %p77_p8 }
  0x1c   :  { %87 = shalt.err (!%p84_p12)
}
  0x1d   :  { %s88_s24 = scalar_lea.hbm %s147_s1, 256 }
  0x1e   :  { %p89_p13 = scmp.ne.s32.totalorder %s147_s1, %s88_s24  ;;  %p92_p0 = scmp.lt.u32.totalorder %s88_s24, %s147_s1 }
  0x20   :  { %p94_p1 = pnand %p92_p0, %p89_p13 }
  0x22   :  { %97 = shalt.err (!%p94_p1)
}
  0x23   :  { %42 = dma.vmem_to_hbm [thread:$0]  %s37_s21, 256, %s147_s1, [#allocation4], %s103_s16, %s103_s16, %s104_s17  }
  0x24   :  { %100 = dma.done.wait [#allocation4], 256  }
  0x25   :  { %101 = vsyncadd [#allocation4], 4294967040 }
  0x26   :  { %46 = vsyncpa [#allocation3], 1 }
  0x27   :  { %47 = vsyncpa [#allocation4], 1 }

</bundles_post_ra>
